<compile_context>
chip_gen: v7x
topology: tpu7x:2x2x1
jax: 0.10.0
libtpu: 0.0.40
codegen_flags: <defaults>
</compile_context>

<pallas_src>
import functools

import jax
import jax.numpy as jnp
from jax.experimental import pallas as pl
from jax.experimental.pallas import tpu as pltpu

BN_EPS = 1e-5
LANE = 128


def _bn_train(x, gamma, beta):
    """BatchNorm1d, training mode, fused single-pass batch statistics (f32)."""
    inv_b = 1.0 / x.shape[0]
    mean = jnp.sum(x, axis=0, keepdims=True) * inv_b
    mean_sq = jnp.sum(x * x, axis=0, keepdims=True) * inv_b
    var = mean_sq - mean * mean                      # biased variance
    scale = gamma * jax.lax.rsqrt(var + BN_EPS)
    shift = beta - mean * scale
    return x * scale + shift


def _othello_kernel(num_layers, action_size,
                    s_ref, w1_ref, b1_ref, g1_ref, be1_ref,
                    rw_ref, rb_ref, rg_ref, rbe_ref,
                    wpv_ref, bpv_ref,
                    out_ref):
    # ---- fc1 -> bn -> relu ------------------------------------------------
    # s / w1 are bf16; accumulate in f32 on the MXU.
    h = jnp.dot(s_ref[...], w1_ref[...],
                preferred_element_type=jnp.float32) + b1_ref[...]
    h = jnp.maximum(_bn_train(h, g1_ref[...], be1_ref[...]), 0.0)

    # ---- residual blocks: x + relu(bn(fc(x))) -----------------------------
    for i in range(num_layers):
        out = jnp.dot(h.astype(jnp.bfloat16), rw_ref[i],
                      preferred_element_type=jnp.float32) + rb_ref[i]
        out = jnp.maximum(_bn_train(out, rg_ref[i], rbe_ref[i]), 0.0)
        h = h + out

    # ---- fused policy + value head (lane-padded to a 128 multiple) --------
    fused = jnp.dot(h.astype(jnp.bfloat16), wpv_ref[...],
                    preferred_element_type=jnp.float32) + bpv_ref[...]  # (B, P)

    col = jax.lax.broadcasted_iota(jnp.int32, fused.shape, 1)
    is_logit = col < action_size

    # log_softmax over the real action lanes only (padded lanes -> -inf).
    logits = jnp.where(is_logit, fused, -jnp.inf)
    m = jnp.max(logits, axis=1, keepdims=True)
    lse = jnp.log(jnp.sum(jnp.exp(logits - m), axis=1, keepdims=True)) + m

    logp = fused - lse
    value = jnp.tanh(fused)                           # value lives in lane A

    out_ref[...] = jnp.where(is_logit, logp,
                             jnp.where(col == action_size, value, 0.0))


def _prepare_params(params):
    """Transpose to (in, out), fuse policy+value head, lane-pad, cast to bf16."""
    (w1, b1, g1, be1, rw, rb, rg, rbe, wp, bp, wv, bv) = params
    action_size = wp.shape[0]
    padded = ((action_size + 1 + LANE - 1) // LANE) * LANE

    w1_t = jnp.transpose(w1).astype(jnp.bfloat16)                 # (in, H)
    rw_t = jnp.transpose(rw, (0, 2, 1)).astype(jnp.bfloat16)      # (L, H, H)

    # Fused head: columns [0, A) = policy, column A = value, rest = zero pad.
    wpv = jnp.concatenate([jnp.transpose(wp), jnp.transpose(wv)], axis=1)
    bpv = jnp.concatenate([bp, bv], axis=1)
    wpv = jnp.pad(wpv, ((0, 0), (0, padded - (action_size + 1)))
                  ).astype(jnp.bfloat16)                          # (H, P)
    bpv = jnp.pad(bpv, ((0, 0), (0, padded - (action_size + 1)))
                  ).astype(jnp.float32)                           # (1, P)

    prepped = (w1_t, b1.astype(jnp.float32), g1.astype(jnp.float32),
               be1.astype(jnp.float32), rw_t, rb.astype(jnp.float32),
               rg.astype(jnp.float32), rbe.astype(jnp.float32), wpv, bpv)
    return prepped, action_size, padded


def othello_forward(s, params, *, num_layers):
    """s: (B, board_x, board_y) float. Returns (log_policy (B,A), value (B,1))."""
    B, bx, by = s.shape
    in_dim = bx * by
    s_flat = s.reshape(B, in_dim).astype(jnp.bfloat16)

    prepped, action_size, padded = _prepare_params(params)
    hidden = prepped[0].shape[1]

    vmem = pl.BlockSpec(memory_space=pltpu.MemorySpace.VMEM)
    kernel = functools.partial(_othello_kernel, num_layers, action_size)

    flops = 2 * B * (in_dim * hidden
                     + num_layers * hidden * hidden
                     + hidden * padded)
    transcendentals = B * (padded + 1) + (num_layers + 1) * hidden
    bytes_accessed = (s_flat.size * s_flat.dtype.itemsize
                      + sum(p.size * p.dtype.itemsize for p in prepped)
                      + B * padded * 4)

    fused_out = pl.pallas_call(
        kernel,
        out_shape=jax.ShapeDtypeStruct((B, padded), jnp.float32),
        in_specs=[vmem] * 11,
        out_specs=vmem,
        cost_estimate=pl.CostEstimate(
            flops=int(flops),
            transcendentals=int(transcendentals),
            bytes_accessed=int(bytes_accessed)),
    )(s_flat, *prepped)

    logp = fused_out[:, :action_size]
    val = fused_out[:, action_size:action_size + 1]
    return logp, val


def init_params(key, in_dim, hidden_dim, action_size, num_layers):
    """PyTorch-layout parameters: Linear weights are (out_features, in_features)."""
    ks = jax.random.split(key, 12)
    scale = 0.1
    w1 = scale * jax.random.normal(ks[0], (hidden_dim, in_dim), jnp.float32)
    b1 = scale * jax.random.normal(ks[1], (1, hidden_dim), jnp.float32)
    g1 = 1.0 + scale * jax.random.normal(ks[2], (1, hidden_dim), jnp.float32)
    be1 = scale * jax.random.normal(ks[3], (1, hidden_dim), jnp.float32)
    rw = scale * jax.random.normal(ks[4], (num_layers, hidden_dim, hidden_dim), jnp.float32)
    rb = scale * jax.random.normal(ks[5], (num_layers, 1, hidden_dim), jnp.float32)
    rg = 1.0 + scale * jax.random.normal(ks[6], (num_layers, 1, hidden_dim), jnp.float32)
    rbe = scale * jax.random.normal(ks[7], (num_layers, 1, hidden_dim), jnp.float32)
    wp = scale * jax.random.normal(ks[8], (action_size, hidden_dim), jnp.float32)
    bp = scale * jax.random.normal(ks[9], (1, action_size), jnp.float32)
    wv = scale * jax.random.normal(ks[10], (1, hidden_dim), jnp.float32)
    bv = scale * jax.random.normal(ks[11], (1, 1), jnp.float32)
    return (w1, b1, g1, be1, rw, rb, rg, rbe, wp, bp, wv, bv)


if __name__ == "__main__":
    # Othello-like configuration: 6x6 board, action_size = 6*6 + 1.
    # Batch >= 8 sublanes, hidden = 128 lanes for MXU-friendly tiles.
    BATCH, BX, BY = 8, 6, 6
    HIDDEN, NUM_LAYERS = 128, 4
    ACTION_SIZE = BX * BY + 1

    key = jax.random.PRNGKey(0)
    k_in, k_par = jax.random.split(key)
    s = jax.random.normal(k_in, (BATCH, BX, BY), jnp.float32)
    params = init_params(k_par, BX * BY, HIDDEN, ACTION_SIZE, NUM_LAYERS)

    logp, val = othello_forward(s, params, num_layers=NUM_LAYERS)
    jax.block_until_ready((logp, val))

    assert logp.shape == (BATCH, ACTION_SIZE)
    assert val.shape == (BATCH, 1)
    # log_softmax rows should exp-sum to 1; tanh output is in [-1, 1].
    assert bool(jnp.all(jnp.abs(jnp.sum(jnp.exp(logp), axis=1) - 1.0) < 1e-4))
    assert bool(jnp.all(jnp.abs(val) <= 1.0))

    print("KERNEL_OK")
</pallas_src>

<mosaic_0001>
module attributes {stable_mosaic.version = 11 : i64} {
  func.func @_othello_kernel(%arg0: memref<8x36xbf16, #tpu.memory_space<vmem>>, %arg1: memref<36x128xbf16, #tpu.memory_space<vmem>>, %arg2: memref<1x128xf32, #tpu.memory_space<vmem>>, %arg3: memref<1x128xf32, #tpu.memory_space<vmem>>, %arg4: memref<1x128xf32, #tpu.memory_space<vmem>>, %arg5: memref<4x128x128xbf16, #tpu.memory_space<vmem>>, %arg6: memref<4x1x128xf32, #tpu.memory_space<vmem>>, %arg7: memref<4x1x128xf32, #tpu.memory_space<vmem>>, %arg8: memref<4x1x128xf32, #tpu.memory_space<vmem>>, %arg9: memref<128x128xbf16, #tpu.memory_space<vmem>>, %arg10: memref<1x128xf32, #tpu.memory_space<vmem>>, %arg11: memref<8x128xf32, #tpu.memory_space<vmem>>) attributes {dimension_semantics = [], scalar_prefetch = 0 : i64, scratch_operands = 0 : i64, tpu.core_type = #tpu.core_type<tc>} {
    %c0 = arith.constant 0 : index
    %c0_0 = arith.constant 0 : index
    %0 = vector.load %arg0[%c0, %c0_0] : memref<8x36xbf16, #tpu.memory_space<vmem>>, vector<8x36xbf16>
    %c0_1 = arith.constant 0 : index
    %c0_2 = arith.constant 0 : index
    %1 = vector.load %arg1[%c0_1, %c0_2] : memref<36x128xbf16, #tpu.memory_space<vmem>>, vector<36x128xbf16>
    %cst = arith.constant dense<0.000000e+00> : vector<8x128xf32>
    %2 = tpu.matmul %0, %1, %cst {dimension_numbers = #tpu.dot_dimension_numbers<[1], [0], [0], [1], [0, 0, 1, 1], [], []>} : vector<8x36xbf16>, vector<36x128xbf16>, vector<8x128xf32> -> vector<8x128xf32>
    %c0_3 = arith.constant 0 : index
    %c0_4 = arith.constant 0 : index
    %3 = vector.load %arg2[%c0_3, %c0_4] : memref<1x128xf32, #tpu.memory_space<vmem>>, vector<1x128xf32>
    %4 = vector.broadcast %3 : vector<1x128xf32> to vector<8x128xf32>
    %5 = arith.addf %2, %4 : vector<8x128xf32>
    %c0_5 = arith.constant 0 : index
    %c0_6 = arith.constant 0 : index
    %6 = vector.load %arg3[%c0_5, %c0_6] : memref<1x128xf32, #tpu.memory_space<vmem>>, vector<1x128xf32>
    %c0_7 = arith.constant 0 : index
    %c0_8 = arith.constant 0 : index
    %7 = vector.load %arg4[%c0_7, %c0_8] : memref<1x128xf32, #tpu.memory_space<vmem>>, vector<1x128xf32>
    %cst_9 = arith.constant dense<0.000000e+00> : vector<128xf32>
    %8 = vector.multi_reduction <add>, %5, %cst_9 [0] : vector<8x128xf32> to vector<128xf32>
    %9 = vector.shape_cast %8 : vector<128xf32> to vector<1x128xf32>
    %cst_10 = arith.constant 1.250000e-01 : f32
    %10 = vector.broadcast %cst_10 : f32 to vector<1x128xf32>
    %11 = arith.mulf %9, %10 : vector<1x128xf32>
    %12 = arith.mulf %5, %5 : vector<8x128xf32>
    %cst_11 = arith.constant dense<0.000000e+00> : vector<128xf32>
    %13 = vector.multi_reduction <add>, %12, %cst_11 [0] : vector<8x128xf32> to vector<128xf32>
    %14 = vector.shape_cast %13 : vector<128xf32> to vector<1x128xf32>
    %cst_12 = arith.constant 1.250000e-01 : f32
    %15 = vector.broadcast %cst_12 : f32 to vector<1x128xf32>
    %16 = arith.mulf %14, %15 : vector<1x128xf32>
    %17 = arith.mulf %11, %11 : vector<1x128xf32>
    %18 = arith.subf %16, %17 : vector<1x128xf32>
    %cst_13 = arith.constant 9.99999974E-6 : f32
    %19 = vector.broadcast %cst_13 : f32 to vector<1x128xf32>
    %20 = arith.addf %18, %19 : vector<1x128xf32>
    %21 = math.rsqrt %20 : vector<1x128xf32>
    %22 = arith.mulf %6, %21 : vector<1x128xf32>
    %23 = arith.mulf %11, %22 : vector<1x128xf32>
    %24 = arith.subf %7, %23 : vector<1x128xf32>
    %25 = vector.broadcast %22 : vector<1x128xf32> to vector<8x128xf32>
    %26 = arith.mulf %5, %25 : vector<8x128xf32>
    %27 = vector.broadcast %24 : vector<1x128xf32> to vector<8x128xf32>
    %28 = arith.addf %26, %27 : vector<8x128xf32>
    %cst_14 = arith.constant 0.000000e+00 : f32
    %29 = vector.broadcast %cst_14 : f32 to vector<8x128xf32>
    %30 = arith.maximumf %28, %29 : vector<8x128xf32>
    %31 = arith.truncf %30 : vector<8x128xf32> to vector<8x128xbf16>
    %c0_15 = arith.constant 0 : index
    %c0_16 = arith.constant 0 : index
    %c0_17 = arith.constant 0 : index
    %32 = vector.load %arg5[%c0_15, %c0_16, %c0_17] : memref<4x128x128xbf16, #tpu.memory_space<vmem>>, vector<1x128x128xbf16>
    %33 = vector.shape_cast %32 : vector<1x128x128xbf16> to vector<128x128xbf16>
    %cst_18 = arith.constant dense<0.000000e+00> : vector<8x128xf32>
    %34 = tpu.matmul %31, %33, %cst_18 {dimension_numbers = #tpu.dot_dimension_numbers<[1], [0], [0], [1], [0, 0, 1, 1], [], []>} : vector<8x128xbf16>, vector<128x128xbf16>, vector<8x128xf32> -> vector<8x128xf32>
    %c0_19 = arith.constant 0 : index
    %c0_20 = arith.constant 0 : index
    %c0_21 = arith.constant 0 : index
    %35 = vector.load %arg6[%c0_19, %c0_20, %c0_21] : memref<4x1x128xf32, #tpu.memory_space<vmem>>, vector<1x1x128xf32>
    %36 = vector.shape_cast %35 : vector<1x1x128xf32> to vector<1x128xf32>
    %37 = vector.broadcast %36 : vector<1x128xf32> to vector<8x128xf32>
    %38 = arith.addf %34, %37 : vector<8x128xf32>
    %c0_22 = arith.constant 0 : index
    %c0_23 = arith.constant 0 : index
    %c0_24 = arith.constant 0 : index
    %39 = vector.load %arg7[%c0_22, %c0_23, %c0_24] : memref<4x1x128xf32, #tpu.memory_space<vmem>>, vector<1x1x128xf32>
    %40 = vector.shape_cast %39 : vector<1x1x128xf32> to vector<1x128xf32>
    %c0_25 = arith.constant 0 : index
    %c0_26 = arith.constant 0 : index
    %c0_27 = arith.constant 0 : index
    %41 = vector.load %arg8[%c0_25, %c0_26, %c0_27] : memref<4x1x128xf32, #tpu.memory_space<vmem>>, vector<1x1x128xf32>
    %42 = vector.shape_cast %41 : vector<1x1x128xf32> to vector<1x128xf32>
    %cst_28 = arith.constant dense<0.000000e+00> : vector<128xf32>
    %43 = vector.multi_reduction <add>, %38, %cst_28 [0] : vector<8x128xf32> to vector<128xf32>
    %44 = vector.shape_cast %43 : vector<128xf32> to vector<1x128xf32>
    %cst_29 = arith.constant 1.250000e-01 : f32
    %45 = vector.broadcast %cst_29 : f32 to vector<1x128xf32>
    %46 = arith.mulf %44, %45 : vector<1x128xf32>
    %47 = arith.mulf %38, %38 : vector<8x128xf32>
    %cst_30 = arith.constant dense<0.000000e+00> : vector<128xf32>
    %48 = vector.multi_reduction <add>, %47, %cst_30 [0] : vector<8x128xf32> to vector<128xf32>
    %49 = vector.shape_cast %48 : vector<128xf32> to vector<1x128xf32>
    %cst_31 = arith.constant 1.250000e-01 : f32
    %50 = vector.broadcast %cst_31 : f32 to vector<1x128xf32>
    %51 = arith.mulf %49, %50 : vector<1x128xf32>
    %52 = arith.mulf %46, %46 : vector<1x128xf32>
    %53 = arith.subf %51, %52 : vector<1x128xf32>
    %cst_32 = arith.constant 9.99999974E-6 : f32
    %54 = vector.broadcast %cst_32 : f32 to vector<1x128xf32>
    %55 = arith.addf %53, %54 : vector<1x128xf32>
    %56 = math.rsqrt %55 : vector<1x128xf32>
    %57 = arith.mulf %40, %56 : vector<1x128xf32>
    %58 = arith.mulf %46, %57 : vector<1x128xf32>
    %59 = arith.subf %42, %58 : vector<1x128xf32>
    %60 = vector.broadcast %57 : vector<1x128xf32> to vector<8x128xf32>
    %61 = arith.mulf %38, %60 : vector<8x128xf32>
    %62 = vector.broadcast %59 : vector<1x128xf32> to vector<8x128xf32>
    %63 = arith.addf %61, %62 : vector<8x128xf32>
    %cst_33 = arith.constant 0.000000e+00 : f32
    %64 = vector.broadcast %cst_33 : f32 to vector<8x128xf32>
    %65 = arith.maximumf %63, %64 : vector<8x128xf32>
    %66 = arith.addf %30, %65 : vector<8x128xf32>
    %67 = arith.truncf %66 : vector<8x128xf32> to vector<8x128xbf16>
    %c1 = arith.constant 1 : index
    %c0_34 = arith.constant 0 : index
    %c0_35 = arith.constant 0 : index
    %68 = vector.load %arg5[%c1, %c0_34, %c0_35] : memref<4x128x128xbf16, #tpu.memory_space<vmem>>, vector<1x128x128xbf16>
    %69 = vector.shape_cast %68 : vector<1x128x128xbf16> to vector<128x128xbf16>
    %cst_36 = arith.constant dense<0.000000e+00> : vector<8x128xf32>
    %70 = tpu.matmul %67, %69, %cst_36 {dimension_numbers = #tpu.dot_dimension_numbers<[1], [0], [0], [1], [0, 0, 1, 1], [], []>} : vector<8x128xbf16>, vector<128x128xbf16>, vector<8x128xf32> -> vector<8x128xf32>
    %c1_37 = arith.constant 1 : index
    %c0_38 = arith.constant 0 : index
    %c0_39 = arith.constant 0 : index
    %71 = vector.load %arg6[%c1_37, %c0_38, %c0_39] : memref<4x1x128xf32, #tpu.memory_space<vmem>>, vector<1x1x128xf32>
    %72 = vector.shape_cast %71 : vector<1x1x128xf32> to vector<1x128xf32>
    %73 = vector.broadcast %72 : vector<1x128xf32> to vector<8x128xf32>
    %74 = arith.addf %70, %73 : vector<8x128xf32>
    %c1_40 = arith.constant 1 : index
    %c0_41 = arith.constant 0 : index
    %c0_42 = arith.constant 0 : index
    %75 = vector.load %arg7[%c1_40, %c0_41, %c0_42] : memref<4x1x128xf32, #tpu.memory_space<vmem>>, vector<1x1x128xf32>
    %76 = vector.shape_cast %75 : vector<1x1x128xf32> to vector<1x128xf32>
    %c1_43 = arith.constant 1 : index
    %c0_44 = arith.constant 0 : index
    %c0_45 = arith.constant 0 : index
    %77 = vector.load %arg8[%c1_43, %c0_44, %c0_45] : memref<4x1x128xf32, #tpu.memory_space<vmem>>, vector<1x1x128xf32>
    %78 = vector.shape_cast %77 : vector<1x1x128xf32> to vector<1x128xf32>
    %cst_46 = arith.constant dense<0.000000e+00> : vector<128xf32>
    %79 = vector.multi_reduction <add>, %74, %cst_46 [0] : vector<8x128xf32> to vector<128xf32>
    %80 = vector.shape_cast %79 : vector<128xf32> to vector<1x128xf32>
    %cst_47 = arith.constant 1.250000e-01 : f32
    %81 = vector.broadcast %cst_47 : f32 to vector<1x128xf32>
    %82 = arith.mulf %80, %81 : vector<1x128xf32>
    %83 = arith.mulf %74, %74 : vector<8x128xf32>
    %cst_48 = arith.constant dense<0.000000e+00> : vector<128xf32>
    %84 = vector.multi_reduction <add>, %83, %cst_48 [0] : vector<8x128xf32> to vector<128xf32>
    %85 = vector.shape_cast %84 : vector<128xf32> to vector<1x128xf32>
    %cst_49 = arith.constant 1.250000e-01 : f32
    %86 = vector.broadcast %cst_49 : f32 to vector<1x128xf32>
    %87 = arith.mulf %85, %86 : vector<1x128xf32>
    %88 = arith.mulf %82, %82 : vector<1x128xf32>
    %89 = arith.subf %87, %88 : vector<1x128xf32>
    %cst_50 = arith.constant 9.99999974E-6 : f32
    %90 = vector.broadcast %cst_50 : f32 to vector<1x128xf32>
    %91 = arith.addf %89, %90 : vector<1x128xf32>
    %92 = math.rsqrt %91 : vector<1x128xf32>
    %93 = arith.mulf %76, %92 : vector<1x128xf32>
    %94 = arith.mulf %82, %93 : vector<1x128xf32>
    %95 = arith.subf %78, %94 : vector<1x128xf32>
    %96 = vector.broadcast %93 : vector<1x128xf32> to vector<8x128xf32>
    %97 = arith.mulf %74, %96 : vector<8x128xf32>
    %98 = vector.broadcast %95 : vector<1x128xf32> to vector<8x128xf32>
    %99 = arith.addf %97, %98 : vector<8x128xf32>
    %cst_51 = arith.constant 0.000000e+00 : f32
    %100 = vector.broadcast %cst_51 : f32 to vector<8x128xf32>
    %101 = arith.maximumf %99, %100 : vector<8x128xf32>
    %102 = arith.addf %66, %101 : vector<8x128xf32>
    %103 = arith.truncf %102 : vector<8x128xf32> to vector<8x128xbf16>
    %c2 = arith.constant 2 : index
    %c0_52 = arith.constant 0 : index
    %c0_53 = arith.constant 0 : index
    %104 = vector.load %arg5[%c2, %c0_52, %c0_53] : memref<4x128x128xbf16, #tpu.memory_space<vmem>>, vector<1x128x128xbf16>
    %105 = vector.shape_cast %104 : vector<1x128x128xbf16> to vector<128x128xbf16>
    %cst_54 = arith.constant dense<0.000000e+00> : vector<8x128xf32>
    %106 = tpu.matmul %103, %105, %cst_54 {dimension_numbers = #tpu.dot_dimension_numbers<[1], [0], [0], [1], [0, 0, 1, 1], [], []>} : vector<8x128xbf16>, vector<128x128xbf16>, vector<8x128xf32> -> vector<8x128xf32>
    %c2_55 = arith.constant 2 : index
    %c0_56 = arith.constant 0 : index
    %c0_57 = arith.constant 0 : index
    %107 = vector.load %arg6[%c2_55, %c0_56, %c0_57] : memref<4x1x128xf32, #tpu.memory_space<vmem>>, vector<1x1x128xf32>
    %108 = vector.shape_cast %107 : vector<1x1x128xf32> to vector<1x128xf32>
    %109 = vector.broadcast %108 : vector<1x128xf32> to vector<8x128xf32>
    %110 = arith.addf %106, %109 : vector<8x128xf32>
    %c2_58 = arith.constant 2 : index
    %c0_59 = arith.constant 0 : index
    %c0_60 = arith.constant 0 : index
    %111 = vector.load %arg7[%c2_58, %c0_59, %c0_60] : memref<4x1x128xf32, #tpu.memory_space<vmem>>, vector<1x1x128xf32>
    %112 = vector.shape_cast %111 : vector<1x1x128xf32> to vector<1x128xf32>
    %c2_61 = arith.constant 2 : index
    %c0_62 = arith.constant 0 : index
    %c0_63 = arith.constant 0 : index
    %113 = vector.load %arg8[%c2_61, %c0_62, %c0_63] : memref<4x1x128xf32, #tpu.memory_space<vmem>>, vector<1x1x128xf32>
    %114 = vector.shape_cast %113 : vector<1x1x128xf32> to vector<1x128xf32>
    %cst_64 = arith.constant dense<0.000000e+00> : vector<128xf32>
    %115 = vector.multi_reduction <add>, %110, %cst_64 [0] : vector<8x128xf32> to vector<128xf32>
    %116 = vector.shape_cast %115 : vector<128xf32> to vector<1x128xf32>
    %cst_65 = arith.constant 1.250000e-01 : f32
    %117 = vector.broadcast %cst_65 : f32 to vector<1x128xf32>
    %118 = arith.mulf %116, %117 : vector<1x128xf32>
    %119 = arith.mulf %110, %110 : vector<8x128xf32>
    %cst_66 = arith.constant dense<0.000000e+00> : vector<128xf32>
    %120 = vector.multi_reduction <add>, %119, %cst_66 [0] : vector<8x128xf32> to vector<128xf32>
    %121 = vector.shape_cast %120 : vector<128xf32> to vector<1x128xf32>
    %cst_67 = arith.constant 1.250000e-01 : f32
    %122 = vector.broadcast %cst_67 : f32 to vector<1x128xf32>
    %123 = arith.mulf %121, %122 : vector<1x128xf32>
    %124 = arith.mulf %118, %118 : vector<1x128xf32>
    %125 = arith.subf %123, %124 : vector<1x128xf32>
    %cst_68 = arith.constant 9.99999974E-6 : f32
    %126 = vector.broadcast %cst_68 : f32 to vector<1x128xf32>
    %127 = arith.addf %125, %126 : vector<1x128xf32>
    %128 = math.rsqrt %127 : vector<1x128xf32>
    %129 = arith.mulf %112, %128 : vector<1x128xf32>
    %130 = arith.mulf %118, %129 : vector<1x128xf32>
    %131 = arith.subf %114, %130 : vector<1x128xf32>
    %132 = vector.broadcast %129 : vector<1x128xf32> to vector<8x128xf32>
    %133 = arith.mulf %110, %132 : vector<8x128xf32>
    %134 = vector.broadcast %131 : vector<1x128xf32> to vector<8x128xf32>
    %135 = arith.addf %133, %134 : vector<8x128xf32>
    %cst_69 = arith.constant 0.000000e+00 : f32
    %136 = vector.broadcast %cst_69 : f32 to vector<8x128xf32>
    %137 = arith.maximumf %135, %136 : vector<8x128xf32>
    %138 = arith.addf %102, %137 : vector<8x128xf32>
    %139 = arith.truncf %138 : vector<8x128xf32> to vector<8x128xbf16>
    %c3 = arith.constant 3 : index
    %c0_70 = arith.constant 0 : index
    %c0_71 = arith.constant 0 : index
    %140 = vector.load %arg5[%c3, %c0_70, %c0_71] : memref<4x128x128xbf16, #tpu.memory_space<vmem>>, vector<1x128x128xbf16>
    %141 = vector.shape_cast %140 : vector<1x128x128xbf16> to vector<128x128xbf16>
    %cst_72 = arith.constant dense<0.000000e+00> : vector<8x128xf32>
    %142 = tpu.matmul %139, %141, %cst_72 {dimension_numbers = #tpu.dot_dimension_numbers<[1], [0], [0], [1], [0, 0, 1, 1], [], []>} : vector<8x128xbf16>, vector<128x128xbf16>, vector<8x128xf32> -> vector<8x128xf32>
    %c3_73 = arith.constant 3 : index
    %c0_74 = arith.constant 0 : index
    %c0_75 = arith.constant 0 : index
    %143 = vector.load %arg6[%c3_73, %c0_74, %c0_75] : memref<4x1x128xf32, #tpu.memory_space<vmem>>, vector<1x1x128xf32>
    %144 = vector.shape_cast %143 : vector<1x1x128xf32> to vector<1x128xf32>
    %145 = vector.broadcast %144 : vector<1x128xf32> to vector<8x128xf32>
    %146 = arith.addf %142, %145 : vector<8x128xf32>
    %c3_76 = arith.constant 3 : index
    %c0_77 = arith.constant 0 : index
    %c0_78 = arith.constant 0 : index
    %147 = vector.load %arg7[%c3_76, %c0_77, %c0_78] : memref<4x1x128xf32, #tpu.memory_space<vmem>>, vector<1x1x128xf32>
    %148 = vector.shape_cast %147 : vector<1x1x128xf32> to vector<1x128xf32>
    %c3_79 = arith.constant 3 : index
    %c0_80 = arith.constant 0 : index
    %c0_81 = arith.constant 0 : index
    %149 = vector.load %arg8[%c3_79, %c0_80, %c0_81] : memref<4x1x128xf32, #tpu.memory_space<vmem>>, vector<1x1x128xf32>
    %150 = vector.shape_cast %149 : vector<1x1x128xf32> to vector<1x128xf32>
    %cst_82 = arith.constant dense<0.000000e+00> : vector<128xf32>
    %151 = vector.multi_reduction <add>, %146, %cst_82 [0] : vector<8x128xf32> to vector<128xf32>
    %152 = vector.shape_cast %151 : vector<128xf32> to vector<1x128xf32>
    %cst_83 = arith.constant 1.250000e-01 : f32
    %153 = vector.broadcast %cst_83 : f32 to vector<1x128xf32>
    %154 = arith.mulf %152, %153 : vector<1x128xf32>
    %155 = arith.mulf %146, %146 : vector<8x128xf32>
    %cst_84 = arith.constant dense<0.000000e+00> : vector<128xf32>
    %156 = vector.multi_reduction <add>, %155, %cst_84 [0] : vector<8x128xf32> to vector<128xf32>
    %157 = vector.shape_cast %156 : vector<128xf32> to vector<1x128xf32>
    %cst_85 = arith.constant 1.250000e-01 : f32
    %158 = vector.broadcast %cst_85 : f32 to vector<1x128xf32>
    %159 = arith.mulf %157, %158 : vector<1x128xf32>
    %160 = arith.mulf %154, %154 : vector<1x128xf32>
    %161 = arith.subf %159, %160 : vector<1x128xf32>
    %cst_86 = arith.constant 9.99999974E-6 : f32
    %162 = vector.broadcast %cst_86 : f32 to vector<1x128xf32>
    %163 = arith.addf %161, %162 : vector<1x128xf32>
    %164 = math.rsqrt %163 : vector<1x128xf32>
    %165 = arith.mulf %148, %164 : vector<1x128xf32>
    %166 = arith.mulf %154, %165 : vector<1x128xf32>
    %167 = arith.subf %150, %166 : vector<1x128xf32>
    %168 = vector.broadcast %165 : vector<1x128xf32> to vector<8x128xf32>
    %169 = arith.mulf %146, %168 : vector<8x128xf32>
    %170 = vector.broadcast %167 : vector<1x128xf32> to vector<8x128xf32>
    %171 = arith.addf %169, %170 : vector<8x128xf32>
    %cst_87 = arith.constant 0.000000e+00 : f32
    %172 = vector.broadcast %cst_87 : f32 to vector<8x128xf32>
    %173 = arith.maximumf %171, %172 : vector<8x128xf32>
    %174 = arith.addf %138, %173 : vector<8x128xf32>
    %175 = arith.truncf %174 : vector<8x128xf32> to vector<8x128xbf16>
    %c0_88 = arith.constant 0 : index
    %c0_89 = arith.constant 0 : index
    %176 = vector.load %arg9[%c0_88, %c0_89] : memref<128x128xbf16, #tpu.memory_space<vmem>>, vector<128x128xbf16>
    %cst_90 = arith.constant dense<0.000000e+00> : vector<8x128xf32>
    %177 = tpu.matmul %175, %176, %cst_90 {dimension_numbers = #tpu.dot_dimension_numbers<[1], [0], [0], [1], [0, 0, 1, 1], [], []>} : vector<8x128xbf16>, vector<128x128xbf16>, vector<8x128xf32> -> vector<8x128xf32>
    %c0_91 = arith.constant 0 : index
    %c0_92 = arith.constant 0 : index
    %178 = vector.load %arg10[%c0_91, %c0_92] : memref<1x128xf32, #tpu.memory_space<vmem>>, vector<1x128xf32>
    %179 = vector.broadcast %178 : vector<1x128xf32> to vector<8x128xf32>
    %180 = arith.addf %177, %179 : vector<8x128xf32>
    %181 = tpu.iota {dimensions = array<i32: 1>} : vector<8x128xi32>
    %c37_i32 = arith.constant 37 : i32
    %182 = vector.broadcast %c37_i32 : i32 to vector<8x128xi32>
    %183 = arith.cmpi slt, %181, %182 : vector<8x128xi32>
    %cst_93 = arith.constant 0xFF800000 : f32
    %184 = vector.broadcast %cst_93 : f32 to vector<8x128xf32>
    %185 = arith.select %183, %180, %184 : vector<8x128xi1>, vector<8x128xf32>
    %cst_94 = arith.constant dense<0xFF800000> : vector<8xf32>
    %186 = vector.multi_reduction <maximumf>, %185, %cst_94 [1] : vector<8x128xf32> to vector<8xf32>
    %187 = vector.shape_cast %186 : vector<8xf32> to vector<8x1xf32>
    %188 = vector.broadcast %187 : vector<8x1xf32> to vector<8x128xf32>
    %189 = arith.subf %185, %188 : vector<8x128xf32>
    %190 = math.exp %189 : vector<8x128xf32>
    %cst_95 = arith.constant dense<0.000000e+00> : vector<8xf32>
    %191 = vector.multi_reduction <add>, %190, %cst_95 [1] : vector<8x128xf32> to vector<8xf32>
    %192 = vector.shape_cast %191 : vector<8xf32> to vector<8x1xf32>
    %193 = math.log %192 : vector<8x1xf32>
    %194 = arith.addf %193, %187 : vector<8x1xf32>
    %195 = vector.broadcast %194 : vector<8x1xf32> to vector<8x128xf32>
    %196 = arith.subf %180, %195 : vector<8x128xf32>
    %197 = math.tanh %180 : vector<8x128xf32>
    %c37_i32_96 = arith.constant 37 : i32
    %198 = vector.broadcast %c37_i32_96 : i32 to vector<8x128xi32>
    %199 = arith.cmpi eq, %181, %198 : vector<8x128xi32>
    %cst_97 = arith.constant 0.000000e+00 : f32
    %200 = vector.broadcast %cst_97 : f32 to vector<8x128xf32>
    %201 = arith.select %199, %197, %200 : vector<8x128xi1>, vector<8x128xf32>
    %202 = arith.select %183, %196, %201 : vector<8x128xi1>, vector<8x128xf32>
    %c0_98 = arith.constant 0 : index
    %c0_99 = arith.constant 0 : index
    %203 = vector.load %arg11[%c0_98, %c0_99] : memref<8x128xf32, #tpu.memory_space<vmem>>, vector<8x128xf32>
    tpu.vector_store %arg11[%c0_98, %c0_99], %202 {strides = array<i32>} : memref<8x128xf32, #tpu.memory_space<vmem>>, vector<8x128xf32>,
    return
  }
}

</mosaic_0001>

<bundles_post_ra>
// kernel: tpu_custom_call.1
= control target key start
LH: loop header
LB: loop body
LE: loop exit
PB: predicated region body
PF: predicated region fallthrough
CT: control target
= control target key end

     0   :  { %16 = vsyncpa [#allocation3], 0  ;;  %s1653_s0 = inlined_call_operand.hbm [shape: bf16[8,36], index: 0, kind: input, shape index: {}]   ;;  %s1654_s1 = inlined_call_operand.hbm [shape: bf16[36,128], index: 1, kind: input, shape index: {}]   ;;  %s1655_s2 = inlined_call_operand.vmem [shape: f32[1,128], index: 2, kind: input, shape index: {}]   ;;  %s1656_s3 = inlined_call_operand.vmem [shape: f32[1,128], index: 3, kind: input, shape index: {}]   ;;  %s1657_s4 = inlined_call_operand.vmem [shape: f32[1,128], index: 4, kind: input, shape index: {}]   ;;  %s1658_s5 = inlined_call_operand.hbm [shape: bf16[4,128,128], index: 5, kind: input, shape index: {}]   ;;  %s1659_s6 = inlined_call_operand.vmem [shape: f32[4,1,128], index: 6, kind: input, shape index: {}]   ;;  %s1660_s7 = inlined_call_operand.vmem [shape: f32[4,1,128], index: 7, kind: input, shape index: {}]   ;;  %s1661_s8 = inlined_call_operand.vmem [shape: f32[4,1,128], index: 8, kind: input, shape index: {}]   ;;  %s1662_s9 = inlined_call_operand.hbm [shape: bf16[128,128], index: 9, kind: input, shape index: {}]   ;;  %s1663_s10 = inlined_call_operand.vmem [shape: f32[1,128], index: 10, kind: input, shape index: {}]   ;;  %s1664_s11 = inlined_call_operand.hbm [shape: f32[8,128], index: 11, kind: output, shape index: {}]  }
   0x1   :  { %17 = vsyncpa [#allocation6], 0 }
   0x2   :  { %18 = vsyncpa [#allocation9], 0 }
   0x3   :  { %19 = vsyncpa [#allocation4], 0  ;;  %s1381_s17 = smov [#allocation5]   ;;  %s1263_s21 = scalar_lea.hbm %s1654_s1, 320 }
   0x4   :  { %s35_s18 = sshll.u32 %s1381_s17, 4  ;;  %p1264_p0 = scmp.ne.s32.totalorder %s1654_s1, %s1263_s21  ;;  %s36_s18 = int_to_ptr.vmem [resolvable:$true] %s35_s18 }
   0x5   :  { %p1267_p1 = scmp.lt.u32.totalorder %s1263_s21, %s1654_s1 }
   0x7   :  { %p1269_p2 = pnand %p1267_p1, %p1264_p0 }
   0x9   :  { %1272 = shalt.err (!%p1269_p2)
}
   0xa   :  { %s1273_s26 = scalar_lea.vmem %s36_s18, 320  ;;  %p1278_p4 = scmp.lt.s32.totalorder %s36_s18, %s36_s18 }
   0xb   :  { %p1274_p3 = scmp.ne.s32.totalorder %s36_s18, %s1273_s26  ;;  %p1279_p5 = scmp.lt.s32.totalorder %s1273_s26, %s1273_s26 }
   0xd   :  { %p1280_p6 = por %p1279_p5, %p1278_p4 }
   0xf   :  { %p1281_p7 = pnand %p1280_p6, %p1274_p3 }
  0x11   :  { %1284 = shalt.err (!%p1281_p7)
}
  0x12   :  { %s1382_s27 = smov 64   ;;  %s1383_s28 = smov 4  }
  0x13   :  { %41 = dma.hbm_to_vmem [thread:$0]  %s1654_s1, 320, %s36_s18, [#allocation6], %s1382_s27, %s1382_s27, %s1383_s28  }
  0x14   :  { %s1384_s12 = smov [#allocation2]   ;;  %s1385_s14 = smov [#allocation7]  }
  0x15   :  { %s26_s13 = sshll.u32 %s1384_s12, 4  ;;  %s53_s15 = sshll.u32 %s1385_s14, 4  ;;  %s27_s13 = int_to_ptr.vmem [resolvable:$true] %s26_s13  ;;  %s54_s15 = int_to_ptr.vmem [resolvable:$true] %s53_s15 }
  0x16   :  { %s1285_s19 = scalar_lea.hbm %s1653_s0, 64 }
  0x17   :  { %p1286_p8 = scmp.ne.s32.totalorder %s1653_s0, %s1285_s19  ;;  %p1289_p9 = scmp.lt.u32.totalorder %s1285_s19, %s1653_s0 }
  0x19   :  { %p1291_p10 = pnand %p1289_p9, %p1286_p8 }
  0x1b   :  { %1294 = shalt.err (!%p1291_p10)
}
  0x1c   :  { %s1295_s1 = scalar_lea.vmem %s27_s13, 64  ;;  %p1300_p12 = scmp.lt.s32.totalorder %s27_s13, %s27_s13 }
  0x1d   :  { %p1296_p11 = scmp.ne.s32.totalorder %s27_s13, %s1295_s1  ;;  %p1301_p13 = scmp.lt.s32.totalorder %s1295_s1, %s1295_s1 }
  0x1f   :  { %p1302_p0 = por %p1301_p13, %p1300_p12 }
  0x21   :  { %p1303_p1 = pnand %p1302_p0, %p1296_p11 }
  0x23   :  { %1306 = shalt.err (!%p1303_p1)
}
  0x24   :  { %29 = dma.hbm_to_vmem [thread:$0]  %s1653_s0, 64, %s27_s13, [#allocation3]  }
  0x25   :  { %s1307_s29 = scalar_lea.hbm %s1658_s5, 4096 }
  0x26   :  { %p1308_p2 = scmp.ne.s32.totalorder %s1658_s5, %s1307_s29  ;;  %p1311_p3 = scmp.lt.u32.totalorder %s1307_s29, %s1658_s5 }
  0x28   :  { %p1313_p4 = pnand %p1311_p3, %p1308_p2 }
  0x2a   :  { %1316 = shalt.err (!%p1313_p4)
}
  0x2b   :  { %s1317_s17 = scalar_lea.vmem %s54_s15, 4096  ;;  %p1322_p6 = scmp.lt.s32.totalorder %s54_s15, %s54_s15 }
  0x2c   :  { %p1318_p5 = scmp.ne.s32.totalorder %s54_s15, %s1317_s17  ;;  %p1323_p7 = scmp.lt.s32.totalorder %s1317_s17, %s1317_s17 }
  0x2e   :  { %p1324_p8 = por %p1323_p7, %p1322_p6 }
  0x30   :  { %p1325_p9 = pnand %p1324_p8, %p1318_p5 }
  0x32   :  { %1328 = shalt.err (!%p1325_p9)
}
  0x33   :  { %59 = dma.hbm_to_vmem [thread:$0]  %s1658_s5, 4096, %s54_s15, [#allocation6], %s1382_s27, %s1382_s27, %s1383_s28  }
  0x34   :  { %s1386_s19 = smov [#allocation8]   ;;  %s1329_s23 = scalar_lea.hbm %s1662_s9, 1024 }
  0x35   :  { %s71_s20 = sshll.u32 %s1386_s19, 4  ;;  %p1330_p10 = scmp.ne.s32.totalorder %s1662_s9, %s1329_s23  ;;  %s72_s20 = int_to_ptr.vmem [resolvable:$true] %s71_s20 }
  0x36   :  { %p1333_p11 = scmp.lt.u32.totalorder %s1329_s23, %s1662_s9 }
  0x38   :  { %p1335_p12 = pnand %p1333_p11, %p1330_p10 }
  0x3a   :  { %1338 = shalt.err (!%p1335_p12)
}
  0x3b   :  { %s1339_s26 = scalar_lea.vmem %s72_s20, 1024  ;;  %p1344_p0 = scmp.lt.s32.totalorder %s72_s20, %s72_s20 }
  0x3c   :  { %p1340_p13 = scmp.ne.s32.totalorder %s72_s20, %s1339_s26  ;;  %p1345_p1 = scmp.lt.s32.totalorder %s1339_s26, %s1339_s26 }
  0x3e   :  { %p1346_p2 = por %p1345_p1, %p1344_p0 }
  0x40   :  { %p1347_p3 = pnand %p1346_p2, %p1340_p13 }
  0x42   :  { %1350 = shalt.err (!%p1347_p3)
}
  0x43   :  { %77 = dma.hbm_to_vmem [thread:$0]  %s1662_s9, 1024, %s72_s20, [#allocation9], %s1382_s27, %s1382_s27, %s1383_s28  }
  0x44   :  { %1373 = dma.done.wait [#allocation3], 64  }
  0x45   :  { %1374 = vsyncadd [#allocation3], 4294967232 }
  0x46   :  { %1375 = dma.done.wait [#allocation6], 4416  }
  0x47   :  { %1376 = vsyncadd [#allocation6], 4294962880 }
  0x48   :  { %1377 = dma.done.wait [#allocation9], 1024  }
  0x49   :  { %1378 = vsyncadd [#allocation9], 4294966272  ;;  %v1387_v0 = vmov 0.0   ;;  %vm1388_vm0 = vmmov 0   ;;  %v1204_v1 = vld [vmem:[#allocation5] sm:$0xff]   ;;  %vm125_vm1 = vcmask 1041408   ;;  %v194_v38 = vlaneseq }
  0x4a   :  { %1085 = vmatprep.subr.bf16.mxu0 %v1387_v0  ;;  %1091 = vmatprep.mubr.msk.bf16.mxu0 %vm1388_vm0, %v1387_v0  ;;  %v1205_v2 = vld [vmem:[#allocation5 + $0x8] sm:$0xff]   ;;  %v1206_v3 = vld [vmem:[#allocation5 + $0x10] ss:$0 sps:$4 sm:$0x33]   ;;  %vm121_vm2 = vcmask 293888   ;;  %v1207_v6 = vld [vmem:[#allocation7] sm:$0xff]  }
  0x4b   :  { %1095 = vmatprep.subr.bf16.mxu1 %v1387_v0  ;;  %1111 = vmatprep.mubr.msk.bf16.mxu1 %vm1388_vm0, %v1387_v0  ;;  %v127_v4 = vsel %vm125_vm1, %v1206_v3, 0  ;;  %v93_v5 = vld [vmem:[#allocation2] sm:$0xf]  ;;  %v1209_v8 = vld [vmem:[#allocation7 + $0x10] sm:$0xff]   ;;  %v1210_v9 = vld [vmem:[#allocation7 + $0x18] sm:$0xff]   ;;  %v195_v39 = vshrl.u32 %v194_v38, 7 }
  0x4c   :  { %1086 = vmatpush3.bf16.msra.mxu0 %v1204_v1  ;;  %1096 = vmatpush3.bf16.msra.mxu1 %v1207_v6  ;;  %v1208_v7 = vld [vmem:[#allocation7 + $0x8] sm:$0xff]   ;;  %v1211_v10 = vld [vmem:[#allocation7 + $0x20] sm:$0xff]   ;;  %v1213_v12 = vld [vmem:[#allocation7 + $0x30] sm:$0xff]  }
  0x4d   :  { %1087 = vmatprep.subr.bf16.mxu0 %v1387_v0  ;;  %1097 = vmatprep.subr.bf16.mxu1 %v1387_v0  ;;  %v1212_v11 = vld [vmem:[#allocation7 + $0x28] sm:$0xff]   ;;  %v1214_v13 = vld [vmem:[#allocation7 + $0x38] sm:$0xff]   ;;  %v1533_v41 = vsub.s32 0, %v195_v39  ;;  %v1215_v53 = vld [vmem:[#allocation7 + $0x40] sm:$0xff]  }
  0x4e   :  { %v977_v14 = vld [vmem:[%s1655_s2] ss:$0 sm:$0xff]  ;;  %v1217_v55 = vld [vmem:[#allocation7 + $0x50] sm:$0xff]   ;;  %v1218_v56 = vld [vmem:[#allocation7 + $0x58] sm:$0xff]  }
  0x4f   :  { %v169_v40 = vld [vmem:[%s1656_s3] sm:$0x1]  ;;  %v1219_v57 = vld [vmem:[#allocation7 + $0x60] sm:$0xff]   ;;  %v1221_v59 = vld [vmem:[#allocation7 + $0x70] sm:$0xff]  }
  0x50   :  { %1088 = vmatpush3.bf16.msra.mxu0 %v1205_v2  ;;  %1098 = vmatpush3.bf16.msra.mxu1 %v1208_v7  ;;  %v170_v44 = vld [vmem:[%s1657_s4] sm:$0x1]  ;;  %v1222_v60 = vld [vmem:[#allocation7 + $0x78] sm:$0xff]  }
  0x51   :  { %1089 = vmatprep.subr.bf16.mxu0 %v1387_v0  ;;  %1099 = vmatprep.subr.bf16.mxu1 %v1387_v0  ;;  %v1216_v54 = vld [vmem:[#allocation7 + $0x48] sm:$0xff]   ;;  %v1226_v39 = vld [vmem:[#allocation7 + $0x98] sm:$0xff]  }
  0x52   :  { %v1220_v58 = vld [vmem:[#allocation7 + $0x68] sm:$0xff]  }
  0x53   :  { %v982_v61 = vld [vmem:[%s1659_s6] ss:$0 sm:$0xff] }
  0x54   :  { %1090 = vmatpush3.bf16.msra.mxu0 %v127_v4  ;;  %1100 = vmatpush3.bf16.msra.mxu1 %v1209_v8 }
  0x55   :  { %1115 = vmatprep.subr.bf16.mxu0 %v1387_v0  ;;  %1101 = vmatprep.subr.bf16.mxu1 %v1387_v0 }
  0x57   :  { %1092 = vmatmul.mubr.msk.bf16.vlgmr.msra.gmra.mrb[0].mxu0 %vm121_vm2, %v93_v5 }
  0x58   :  { %1131 = vmatprep.mubr.msk.bf16.mxu0 %vm1388_vm0, %v1387_v0  ;;  %1102 = vmatpush3.bf16.msra.mxu1 %v1210_v9 }
  0x59   :  { %1103 = vmatprep.subr.bf16.mxu1 %v1387_v0  ;;  %1116 = vmatpush3.bf16.msra.mxu0 %v1215_v53 }
  0x5a   :  { %1117 = vmatprep.subr.bf16.mxu0 %v1387_v0 }
  0x5c   :  { %1104 = vmatpush3.bf16.msra.mxu1 %v1211_v10 }
  0x5d   :  { %1105 = vmatprep.subr.bf16.mxu1 %v1387_v0  ;;  %1118 = vmatpush3.bf16.msra.mxu0 %v1216_v54 }
  0x5e   :  { %1119 = vmatprep.subr.bf16.mxu0 %v1387_v0 }
  0x60   :  { %1106 = vmatpush3.bf16.msra.mxu1 %v1212_v11 }
  0x61   :  { %1107 = vmatprep.subr.bf16.mxu1 %v1387_v0  ;;  %1120 = vmatpush3.bf16.msra.mxu0 %v1217_v55 }
  0x62   :  { %1121 = vmatprep.subr.bf16.mxu0 %v1387_v0 }
  0x64   :  { %1108 = vmatpush3.bf16.msra.mxu1 %v1213_v12 }
  0x65   :  { %1109 = vmatprep.subr.bf16.mxu1 %v1387_v0  ;;  %1122 = vmatpush3.bf16.msra.mxu0 %v1218_v56 }
  0x66   :  { %1123 = vmatprep.subr.bf16.mxu0 %v1387_v0 }
  0x68   :  { %1110 = vmatpush3.bf16.msra.mxu1 %v1214_v13 }
  0x69   :  { %1135 = vmatprep.subr.bf16.mxu1 %v1387_v0  ;;  %1124 = vmatpush3.bf16.msra.mxu0 %v1219_v57 }
  0x6a   :  { %1125 = vmatprep.subr.bf16.mxu0 %v1387_v0 }
  0x6d   :  { %1126 = vmatpush3.bf16.msra.mxu0 %v1220_v58 }
  0x6e   :  { %1127 = vmatprep.subr.bf16.mxu0 %v1387_v0 }
  0x71   :  { %1128 = vmatpush3.bf16.msra.mxu0 %v1221_v59 }
  0x72   :  { %1129 = vmatprep.subr.bf16.mxu0 %v1387_v0 }
  0x75   :  { %1130 = vmatpush3.bf16.msra.mxu0 %v1222_v60 }
  0x76   :  { %1155 = vmatprep.subr.bf16.mxu0 %v1387_v0 }
 0x12a   :  { %v163_v15 = vpop.f32.mrb[0].mxu0 }
 0x12b   :  { %v164_v16 = vadd.f32 %v977_v14, %v163_v15  ;;  %v1093_v17 = vpop.f32.mrb[1].mxu0 }
 0x12c   :  { %v166_v18 = vpop.f32.mrb[2].mxu0 }
 0x12d   :  { %v171_v19 = vrot.slane %v164_v16, 4  ;;  %v178_v20 = vmul.f32 %v164_v16, %v164_v16  ;;  %v1094_v21 = vpop.f32.mrb[3].mxu0 }
 0x12f   :  { %v172_v22 = vadd.f32 %v171_v19, %v164_v16  ;;  %v179_v23 = vrot.slane %v178_v20, 4 }
 0x131   :  { %v173_v24 = vrot.slane %v172_v22, 2  ;;  %v180_v25 = vadd.f32 %v179_v23, %v178_v20 }
 0x133   :  { %v174_v26 = vadd.f32 %v173_v24, %v172_v22  ;;  %v181_v27 = vrot.slane %v180_v25, 2  ;;  %v320_v22 = vld [vmem:[%s1660_s7] sm:$0x1] }
 0x135   :  { %v175_v28 = vrot.slane %v174_v26, 1  ;;  %v182_v29 = vadd.f32 %v181_v27, %v180_v25  ;;  %v321_v25 = vld [vmem:[%s1661_s8] sm:$0x1] }
 0x137   :  { %v176_v30 = vadd.f32 %v175_v28, %v174_v26  ;;  %v183_v31 = vrot.slane %v182_v29, 1 }
 0x139   :  { %v177_v32 = vmul.f32 0.125, %v176_v30  ;;  %v184_v33 = vadd.f32 %v183_v31, %v182_v29 }
 0x13b   :  { %v185_v34 = vmul.f32 0.125, %v184_v33  ;;  %v186_v35 = vmul.f32 %v177_v32, %v177_v32 }
 0x13d   :  { %v187_v36 = vsub.f32 %v185_v34, %v186_v35  ;;  %v1223_v35 = vld [vmem:[#allocation7 + $0x80] sm:$0xff]  }
 0x13f   :  { %v188_v37 = vadd.f32 1e-05, %v187_v36  ;;  %v1224_v36 = vld [vmem:[#allocation7 + $0x88] sm:$0xff]  }
 0x141   :  { %1247 = vrsqrt.f32 %v188_v37  ;;  %v1225_v37 = vld [vmem:[#allocation7 + $0x90] sm:$0xff]  }
 0x14b   :  { %v1248_v42 = vpop.eup %1247 }
 0x14c   :  { %v190_v43 = vmul.f32 %v1248_v42, %v169_v40  ;;  %v1227_v40 = vld [vmem:[#allocation7 + $0xa0] sm:$0xff]   ;;  %v1228_v42 = vld [vmem:[#allocation7 + $0xa8] sm:$0xff]  }
 0x14e   :  { %v191_v45 = vmul.f32 %v190_v43, %v177_v32  ;;  %v197_v46 = vrot.slane %v190_v43, %v1533_v41  ;;  %v1229_v43 = vld [vmem:[#allocation7 + $0xb0] sm:$0xff]  }
 0x150   :  { %v192_v47 = vsub.f32 %v170_v44, %v191_v45  ;;  %v199_v48 = vmul.f32 %v197_v46, %v164_v16  ;;  %v1230_v44 = vld [vmem:[#allocation7 + $0xb8] sm:$0xff]   ;;  %v992_v45 = vld [vmem:[%s1659_s6 + $0x1] ss:$0 sm:$0xff] }
 0x152   :  { %v204_v49 = vrot.slane %v192_v47, %v1533_v41 }
 0x154   :  { %v206_v50 = vadd.f32 %v204_v49, %v199_v48 }
 0x156   :  { %v1540_v51 = vmax.f32 %v206_v50, 0.0 }
 0x158   :  { %v208_v52 = vpack.c.bf16 %v1540_v51, %v1540_v51 }
 0x15a   :  { %1112 = vmatmul.mubr.bf16.vlgmr.msra.gmra.mrb[0].mxu1 %v208_v52 }
 0x15b   :  { %1151 = vmatprep.mubr.msk.bf16.mxu1 %vm1388_vm0, %v1387_v0  ;;  %1136 = vmatpush3.bf16.msra.mxu1 %v1223_v35 }
 0x15c   :  { %1137 = vmatprep.subr.bf16.mxu1 %v1387_v0 }
 0x15f   :  { %1138 = vmatpush3.bf16.msra.mxu1 %v1224_v36 }
 0x160   :  { %1139 = vmatprep.subr.bf16.mxu1 %v1387_v0 }
 0x163   :  { %1140 = vmatpush3.bf16.msra.mxu1 %v1225_v37 }
 0x164   :  { %1141 = vmatprep.subr.bf16.mxu1 %v1387_v0 }
 0x167   :  { %1142 = vmatpush3.bf16.msra.mxu1 %v1226_v39 }
 0x168   :  { %1143 = vmatprep.subr.bf16.mxu1 %v1387_v0 }
 0x16b   :  { %1144 = vmatpush3.bf16.msra.mxu1 %v1227_v40 }
 0x16c   :  { %1145 = vmatprep.subr.bf16.mxu1 %v1387_v0 }
 0x16f   :  { %1146 = vmatpush3.bf16.msra.mxu1 %v1228_v42 }
 0x170   :  { %1147 = vmatprep.subr.bf16.mxu1 %v1387_v0 }
 0x173   :  { %1148 = vmatpush3.bf16.msra.mxu1 %v1229_v43 }
 0x174   :  { %1149 = vmatprep.subr.bf16.mxu1 %v1387_v0 }
 0x177   :  { %1150 = vmatpush3.bf16.msra.mxu1 %v1230_v44 }
 0x178   :  { %1175 = vmatprep.subr.bf16.mxu1 %v1387_v0 }
 0x22d   :  { %v314_v62 = vpop.f32.mrb[0].mxu1 }
 0x22e   :  { %v315_v63 = vadd.f32 %v982_v61, %v314_v62  ;;  %v1113_v1 = vpop.f32.mrb[1].mxu1 }
 0x22f   :  { %v317_v2 = vpop.f32.mrb[2].mxu1 }
 0x230   :  { %v322_v3 = vrot.slane %v315_v63, 4  ;;  %v329_v4 = vmul.f32 %v315_v63, %v315_v63  ;;  %v1114_v5 = vpop.f32.mrb[3].mxu1 }
 0x232   :  { %v323_v6 = vadd.f32 %v322_v3, %v315_v63  ;;  %v330_v7 = vrot.slane %v329_v4, 4 }
 0x234   :  { %v324_v8 = vrot.slane %v323_v6, 2  ;;  %v331_v9 = vadd.f32 %v330_v7, %v329_v4 }
 0x236   :  { %v325_v10 = vadd.f32 %v324_v8, %v323_v6  ;;  %v332_v11 = vrot.slane %v331_v9, 2  ;;  %v1001_v6 = vld [vmem:[%s1660_s7 + $0x1] sm:$0x1] }
 0x238   :  { %v326_v12 = vrot.slane %v325_v10, 1  ;;  %v333_v13 = vadd.f32 %v332_v11, %v331_v9  ;;  %v1002_v9 = vld [vmem:[%s1661_s8 + $0x1] sm:$0x1] }
 0x23a   :  { %v327_v14 = vadd.f32 %v326_v12, %v325_v10  ;;  %v334_v15 = vrot.slane %v333_v13, 1 }
 0x23c   :  { %v328_v16 = vmul.f32 0.125, %v327_v14  ;;  %v335_v17 = vadd.f32 %v334_v15, %v333_v13 }
 0x23e   :  { %v336_v18 = vmul.f32 0.125, %v335_v17  ;;  %v337_v19 = vmul.f32 %v328_v16, %v328_v16 }
 0x240   :  { %v338_v20 = vsub.f32 %v336_v18, %v337_v19  ;;  %v1231_v19 = vld [vmem:[#allocation7 + $0xc0] sm:$0xff]  }
 0x242   :  { %v339_v21 = vadd.f32 1e-05, %v338_v20  ;;  %v1232_v20 = vld [vmem:[#allocation7 + $0xc8] sm:$0xff]  }
 0x244   :  { %1249 = vrsqrt.f32 %v339_v21  ;;  %v1233_v21 = vld [vmem:[#allocation7 + $0xd0] sm:$0xff]  }
 0x24e   :  { %v1250_v23 = vpop.eup %1249 }
 0x24f   :  { %v341_v24 = vmul.f32 %v1250_v23, %v320_v22  ;;  %v1234_v22 = vld [vmem:[#allocation7 + $0xd8] sm:$0xff]   ;;  %v1235_v23 = vld [vmem:[#allocation7 + $0xe0] sm:$0xff]  }
 0x251   :  { %v342_v26 = vmul.f32 %v341_v24, %v328_v16  ;;  %v348_v27 = vrot.slane %v341_v24, %v1533_v41  ;;  %v1236_v24 = vld [vmem:[#allocation7 + $0xe8] sm:$0xff]  }
 0x253   :  { %v343_v28 = vsub.f32 %v321_v25, %v342_v26  ;;  %v350_v29 = vmul.f32 %v348_v27, %v315_v63  ;;  %v1237_v25 = vld [vmem:[#allocation7 + $0xf0] sm:$0xff]   ;;  %v1238_v26 = vld [vmem:[#allocation7 + $0xf8] sm:$0xff]   ;;  %v1004_v27 = vld [vmem:[%s1659_s6 + $0x2] ss:$0 sm:$0xff] }
 0x255   :  { %v355_v30 = vrot.slane %v343_v28, %v1533_v41 }
 0x257   :  { %v357_v31 = vadd.f32 %v355_v30, %v350_v29 }
 0x259   :  { %v358_v32 = vmax.f32 %v357_v31, 0.0 }
 0x25b   :  { %v1566_v33 = vadd.f32 %v358_v32, %v1540_v51 }
 0x25d   :  { %v360_v34 = vpack.c.bf16 %v1566_v33, %v1566_v33 }
 0x25f   :  { %1132 = vmatmul.mubr.bf16.vlgmr.msra.gmra.mrb[4].mxu0 %v360_v34 }
 0x260   :  { %1171 = vmatprep.mubr.msk.bf16.mxu0 %vm1388_vm0, %v1387_v0  ;;  %1156 = vmatpush3.bf16.msra.mxu0 %v1231_v19 }
 0x261   :  { %1157 = vmatprep.subr.bf16.mxu0 %v1387_v0 }
 0x264   :  { %1158 = vmatpush3.bf16.msra.mxu0 %v1232_v20 }
 0x265   :  { %1159 = vmatprep.subr.bf16.mxu0 %v1387_v0 }
 0x268   :  { %1160 = vmatpush3.bf16.msra.mxu0 %v1233_v21 }
 0x269   :  { %1161 = vmatprep.subr.bf16.mxu0 %v1387_v0 }
 0x26c   :  { %1162 = vmatpush3.bf16.msra.mxu0 %v1234_v22 }
 0x26d   :  { %1163 = vmatprep.subr.bf16.mxu0 %v1387_v0 }
 0x270   :  { %1164 = vmatpush3.bf16.msra.mxu0 %v1235_v23 }
 0x271   :  { %1165 = vmatprep.subr.bf16.mxu0 %v1387_v0 }
 0x274   :  { %1166 = vmatpush3.bf16.msra.mxu0 %v1236_v24 }
 0x275   :  { %1167 = vmatprep.subr.bf16.mxu0 %v1387_v0 }
 0x278   :  { %1168 = vmatpush3.bf16.msra.mxu0 %v1237_v25 }
 0x279   :  { %1169 = vmatprep.subr.bf16.mxu0 %v1387_v0 }
 0x27c   :  { %1170 = vmatpush3.bf16.msra.mxu0 %v1238_v26 }
 0x332   :  { %v468_v46 = vpop.f32.mrb[4].mxu0 }
 0x333   :  { %v469_v47 = vadd.f32 %v992_v45, %v468_v46  ;;  %v1133_v48 = vpop.f32.mrb[5].mxu0 }
 0x334   :  { %v471_v49 = vpop.f32.mrb[6].mxu0 }
 0x335   :  { %v478_v50 = vrot.slane %v469_v47, 4  ;;  %v485_v51 = vmul.f32 %v469_v47, %v469_v47  ;;  %v1134_v52 = vpop.f32.mrb[7].mxu0 }
 0x337   :  { %v479_v53 = vadd.f32 %v478_v50, %v469_v47  ;;  %v486_v54 = vrot.slane %v485_v51, 4 }
 0x339   :  { %v480_v55 = vrot.slane %v479_v53, 2  ;;  %v487_v56 = vadd.f32 %v486_v54, %v485_v51 }
 0x33b   :  { %v481_v57 = vadd.f32 %v480_v55, %v479_v53  ;;  %v488_v58 = vrot.slane %v487_v56, 2  ;;  %v1013_v53 = vld [vmem:[%s1660_s7 + $0x2] sm:$0x1] }
 0x33d   :  { %v482_v59 = vrot.slane %v481_v57, 1  ;;  %v489_v60 = vadd.f32 %v488_v58, %v487_v56  ;;  %v1014_v56 = vld [vmem:[%s1661_s8 + $0x2] sm:$0x1] }
 0x33f   :  { %v483_v61 = vadd.f32 %v482_v59, %v481_v57  ;;  %v490_v62 = vrot.slane %v489_v60, 1 }
 0x341   :  { %v484_v63 = vmul.f32 0.125, %v483_v61  ;;  %v491_v1 = vadd.f32 %v490_v62, %v489_v60 }
 0x343   :  { %v492_v2 = vmul.f32 0.125, %v491_v1  ;;  %v493_v3 = vmul.f32 %v484_v63, %v484_v63 }
 0x345   :  { %v494_v4 = vsub.f32 %v492_v2, %v493_v3  ;;  %v1239_v3 = vld [vmem:[#allocation8] sm:$0xff]  }
 0x347   :  { %v495_v5 = vadd.f32 1e-05, %v494_v4  ;;  %v1240_v4 = vld [vmem:[#allocation8 + $0x8] sm:$0xff]  }
 0x349   :  { %1251 = vrsqrt.f32 %v495_v5  ;;  %v1241_v5 = vld [vmem:[#allocation8 + $0x10] sm:$0xff]  }
 0x353   :  { %v1252_v7 = vpop.eup %1251 }
 0x354   :  { %v497_v8 = vmul.f32 %v1252_v7, %v1001_v6  ;;  %v1242_v6 = vld [vmem:[#allocation8 + $0x18] sm:$0xff]   ;;  %v1243_v7 = vld [vmem:[#allocation8 + $0x20] sm:$0xff]  }
 0x356   :  { %v498_v10 = vmul.f32 %v497_v8, %v484_v63  ;;  %v504_v11 = vrot.slane %v497_v8, %v1533_v41  ;;  %v1244_v8 = vld [vmem:[#allocation8 + $0x28] sm:$0xff]  }
 0x358   :  { %v499_v12 = vsub.f32 %v1002_v9, %v498_v10  ;;  %v506_v13 = vmul.f32 %v504_v11, %v469_v47  ;;  %v1245_v9 = vld [vmem:[#allocation8 + $0x30] sm:$0xff]   ;;  %v1246_v10 = vld [vmem:[#allocation8 + $0x38] sm:$0xff]   ;;  %v1016_v11 = vld [vmem:[%s1659_s6 + $0x3] ss:$0 sm:$0xff] }
 0x35a   :  { %v511_v14 = vrot.slane %v499_v12, %v1533_v41 }
 0x35c   :  { %v513_v15 = vadd.f32 %v511_v14, %v506_v13 }
 0x35e   :  { %v514_v16 = vmax.f32 %v513_v15, 0.0 }
 0x360   :  { %v1592_v17 = vadd.f32 %v514_v16, %v1566_v33 }
 0x362   :  { %v516_v18 = vpack.c.bf16 %v1592_v17, %v1592_v17 }
 0x364   :  { %1152 = vmatmul.mubr.bf16.vlgmr.msra.gmra.mrb[4].mxu1 %v516_v18 }
 0x365   :  { %1191 = vmatprep.mubr.msk.bf16.mxu1 %vm1388_vm0, %v1387_v0  ;;  %1176 = vmatpush3.bf16.msra.mxu1 %v1239_v3 }
 0x366   :  { %1177 = vmatprep.subr.bf16.mxu1 %v1387_v0 }
 0x369   :  { %1178 = vmatpush3.bf16.msra.mxu1 %v1240_v4 }
 0x36a   :  { %1179 = vmatprep.subr.bf16.mxu1 %v1387_v0 }
 0x36d   :  { %1180 = vmatpush3.bf16.msra.mxu1 %v1241_v5 }
 0x36e   :  { %1181 = vmatprep.subr.bf16.mxu1 %v1387_v0 }
 0x371   :  { %1182 = vmatpush3.bf16.msra.mxu1 %v1242_v6 }
 0x372   :  { %1183 = vmatprep.subr.bf16.mxu1 %v1387_v0 }
 0x375   :  { %1184 = vmatpush3.bf16.msra.mxu1 %v1243_v7 }
 0x376   :  { %1185 = vmatprep.subr.bf16.mxu1 %v1387_v0 }
 0x379   :  { %1186 = vmatpush3.bf16.msra.mxu1 %v1244_v8 }
 0x37a   :  { %1187 = vmatprep.subr.bf16.mxu1 %v1387_v0 }
 0x37d   :  { %1188 = vmatpush3.bf16.msra.mxu1 %v1245_v9 }
 0x37e   :  { %1189 = vmatprep.subr.bf16.mxu1 %v1387_v0 }
 0x381   :  { %1190 = vmatpush3.bf16.msra.mxu1 %v1246_v10 }
 0x437   :  { %v624_v28 = vpop.f32.mrb[4].mxu1 }
 0x438   :  { %v625_v29 = vadd.f32 %v1004_v27, %v624_v28  ;;  %v1153_v30 = vpop.f32.mrb[5].mxu1 }
 0x439   :  { %v627_v31 = vpop.f32.mrb[6].mxu1 }
 0x43a   :  { %v634_v32 = vrot.slane %v625_v29, 4  ;;  %v641_v33 = vmul.f32 %v625_v29, %v625_v29  ;;  %v1154_v34 = vpop.f32.mrb[7].mxu1 }
 0x43b   :  { %v1025_v34 = vld [vmem:[%s1660_s7 + $0x3] sm:$0x1] }
 0x43c   :  { %v635_v35 = vadd.f32 %v634_v32, %v625_v29  ;;  %v642_v36 = vrot.slane %v641_v33, 4 }
 0x43e   :  { %v636_v37 = vrot.slane %v635_v35, 2  ;;  %v643_v39 = vadd.f32 %v642_v36, %v641_v33 }
 0x440   :  { %v637_v40 = vadd.f32 %v636_v37, %v635_v35  ;;  %v644_v42 = vrot.slane %v643_v39, 2  ;;  %v1026_v37 = vld [vmem:[%s1661_s8 + $0x3] sm:$0x1]  ;;  %s1389_s8 = smov [#allocation10]  }
 0x442   :  { %v638_v43 = vrot.slane %v637_v40, 1  ;;  %v645_v44 = vadd.f32 %v644_v42, %v643_v39 }
 0x444   :  { %v639_v45 = vadd.f32 %v638_v43, %v637_v40  ;;  %v646_v46 = vrot.slane %v645_v44, 1 }
 0x446   :  { %v640_v47 = vmul.f32 0.125, %v639_v45  ;;  %v647_v48 = vadd.f32 %v646_v46, %v645_v44 }
 0x448   :  { %v648_v49 = vmul.f32 0.125, %v647_v48  ;;  %v649_v50 = vmul.f32 %v640_v47, %v640_v47 }
 0x44a   :  { %v650_v51 = vsub.f32 %v648_v49, %v649_v50  ;;  %v941_v49 = vand.u32 127, %v194_v38  ;;  %v1027_v50 = vld [vmem:[%s1663_s10] ss:$0 sm:$0xff]  ;;  %s966_s10 = sshll.u32 %s1389_s8, 4  ;;  %s967_s10 = int_to_ptr.vmem [resolvable:$true] %s966_s10 }
 0x44b   :  { %s1351_s29 = scalar_lea.vmem %s967_s10, 128  ;;  %p1356_p5 = scmp.lt.s32.totalorder %s967_s10, %s967_s10 }
 0x44c   :  { %v651_v52 = vadd.f32 1e-05, %v650_v51  ;;  %vm942_vm3 = vcmp.lt.s32.totalorder %v941_v49, 37  ;;  %vm956_vm4 = vcmp.eq.s32.totalorder %v941_v49, 37  ;;  %p1352_p4 = scmp.ne.s32.totalorder %s967_s10, %s1351_s29  ;;  %p1357_p6 = scmp.lt.s32.totalorder %s1351_s29, %s1351_s29 }
 0x44e   :  { %1253 = vrsqrt.f32 %v651_v52  ;;  %p1358_p7 = por %p1357_p6, %p1356_p5 }
 0x450   :  { %p1359_p8 = pnand %p1358_p7, %p1352_p4 }
 0x458   :  { %v1254_v54 = vpop.eup %1253 }
 0x459   :  { %v653_v55 = vmul.f32 %v1254_v54, %v1013_v53 }
 0x45b   :  { %v654_v57 = vmul.f32 %v653_v55, %v640_v47  ;;  %v660_v58 = vrot.slane %v653_v55, %v1533_v41 }
 0x45d   :  { %v655_v59 = vsub.f32 %v1014_v56, %v654_v57  ;;  %v662_v60 = vmul.f32 %v660_v58, %v625_v29 }
 0x45f   :  { %v667_v61 = vrot.slane %v655_v59, %v1533_v41 }
 0x461   :  { %v669_v62 = vadd.f32 %v667_v61, %v662_v60 }
 0x463   :  { %v670_v63 = vmax.f32 %v669_v62, 0.0 }
 0x465   :  { %v671_v1 = vadd.f32 %v670_v63, %v1592_v17 }
 0x467   :  { %v672_v2 = vpack.c.bf16 %v671_v1, %v671_v1 }
 0x469   :  { %1172 = vmatmul.mubr.bf16.vlgmr.msra.gmra.mrb[8].mxu0 %v672_v2 }
 0x53c   :  { %v780_v12 = vpop.f32.mrb[8].mxu0 }
 0x53d   :  { %v781_v13 = vadd.f32 %v1016_v11, %v780_v12  ;;  %v1173_v14 = vpop.f32.mrb[9].mxu0 }
 0x53e   :  { %v783_v15 = vpop.f32.mrb[10].mxu0 }
 0x53f   :  { %v790_v16 = vrot.slane %v781_v13, 4  ;;  %v797_v17 = vmul.f32 %v781_v13, %v781_v13  ;;  %v1174_v18 = vpop.f32.mrb[11].mxu0 }
 0x541   :  { %v791_v19 = vadd.f32 %v790_v16, %v781_v13  ;;  %v798_v20 = vrot.slane %v797_v17, 4 }
 0x543   :  { %v792_v21 = vrot.slane %v791_v19, 2  ;;  %v799_v22 = vadd.f32 %v798_v20, %v797_v17 }
 0x545   :  { %v793_v23 = vadd.f32 %v792_v21, %v791_v19  ;;  %v800_v24 = vrot.slane %v799_v22, 2 }
 0x547   :  { %v794_v25 = vrot.slane %v793_v23, 1  ;;  %v801_v0 = vadd.f32 %v800_v24, %v799_v22 }
 0x549   :  { %v795_v26 = vadd.f32 %v794_v25, %v793_v23  ;;  %v802_v27 = vrot.slane %v801_v0, 1 }
 0x54b   :  { %v796_v28 = vmul.f32 0.125, %v795_v26  ;;  %v803_v29 = vadd.f32 %v802_v27, %v801_v0 }
 0x54d   :  { %v804_v30 = vmul.f32 0.125, %v803_v29  ;;  %v805_v31 = vmul.f32 %v796_v28, %v796_v28 }
 0x54f   :  { %v806_v32 = vsub.f32 %v804_v30, %v805_v31 }
 0x551   :  { %v807_v33 = vadd.f32 1e-05, %v806_v32 }
 0x553   :  { %1255 = vrsqrt.f32 %v807_v33 }
 0x55d   :  { %v1256_v35 = vpop.eup %1255 }
 0x55e   :  { %v809_v36 = vmul.f32 %v1256_v35, %v1025_v34 }
 0x560   :  { %v810_v39 = vmul.f32 %v809_v36, %v796_v28  ;;  %v816_v40 = vrot.slane %v809_v36, %v1533_v41 }
 0x562   :  { %v811_v42 = vsub.f32 %v1026_v37, %v810_v39  ;;  %v818_v43 = vmul.f32 %v816_v40, %v781_v13 }
 0x564   :  { %v823_v44 = vrot.slane %v811_v42, %v1533_v41 }
 0x566   :  { %v825_v45 = vadd.f32 %v823_v44, %v818_v43 }
 0x568   :  { %v826_v46 = vmax.f32 %v825_v45, 0.0 }
 0x56a   :  { %v827_v47 = vadd.f32 %v826_v46, %v671_v1 }
 0x56c   :  { %v828_v48 = vpack.c.bf16 %v827_v47, %v827_v47 }
 0x56e   :  { %1192 = vmatmul.mubr.bf16.vlgmr.msra.gmra.mrb[8].mxu1 %v828_v48 }
 0x641   :  { %v934_v51 = vpop.f32.mrb[8].mxu1 }
 0x642   :  { %v935_v52 = vadd.f32 %v1027_v50, %v934_v51  ;;  %v1193_v53 = vpop.f32.mrb[9].mxu1 }
 0x643   :  { %v937_v54 = vpop.f32.mrb[10].mxu1 }
 0x644   :  { %v1194_v55 = vpop.f32.mrb[11].mxu1  ;;  %v943_v56 = vsel %vm942_vm3, %v935_v52, -inf }
 0x645   :  { %944 = vmax.xlane.f32.xlu0 %v943_v56 }
 0x6d2   :  { %v945_v41 = vpop.xlane.xlu0 %944 }
 0x6d3   :  { %v946_v57 = vsub.f32 %v943_v56, %v945_v41 }
 0x6d5   :  { %v947_v58 = vmul.f32 1.442695, %v946_v57 }
 0x6d7   :  { %1257 = vpow2.f32 %v947_v58 }
 0x6e1   :  { %v1258_v59 = vpop.eup %1257 }
 0x6e2   :  { %949 = vadd.xlane.f32.xlu0 %v1258_v59 }
 0x76f   :  { %v950_v38 = vpop.xlane.xlu0 %949 }
 0x770   :  { %1259 = vlog2.f32 %v950_v38 }
 0x771   :  { %1261 = vtanh.f32 %v935_v52 }
 0x77a   :  { %v1260_v60 = vpop.eup %1259 }
 0x77b   :  { %v952_v61 = vmul.f32 0.6931472, %v1260_v60  ;;  %v1262_v62 = vpop.eup %1261 }
 0x77c   :  { %v957_v2 = vsel %vm956_vm4, %v1262_v62, 0.0 }
 0x77d   :  { %v953_v63 = vadd.f32 %v952_v61, %v945_v41 }
 0x77f   :  { %v954_v1 = vsub.f32 %v935_v52, %v953_v63 }
 0x781   :  { %v958_v3 = vsel %vm942_vm3, %v954_v1, %v957_v2 }
 0x782   :  { %959 = vst [vmem:[#allocation10] sm:$0xff] %v958_v3 }
 0x783   :  { %1362 = shalt.err (!%p1359_p8)
}
 0x784   :  { %s1363_s4 = scalar_lea.hbm %s1664_s11, 128 }
 0x785   :  { %p1364_p9 = scmp.ne.s32.totalorder %s1664_s11, %s1363_s4  ;;  %p1367_p10 = scmp.lt.u32.totalorder %s1363_s4, %s1664_s11 }
 0x787   :  { %p1369_p11 = pnand %p1367_p10, %p1364_p9 }
 0x789   :  { %1372 = shalt.err (!%p1369_p11)
}
 0x78a   :  { %969 = dma.vmem_to_hbm [thread:$0]  %s967_s10, 128, %s1664_s11, [#allocation4]  }
 0x78b   :  { %1379 = dma.done.wait [#allocation4], 128  }
 0x78c   :  { %1380 = vsyncadd [#allocation4], 4294967168 }
 0x78d   :  { %973 = vsyncpa [#allocation3], 1 }
 0x78e   :  { %974 = vsyncpa [#allocation6], 1 }
 0x78f   :  { %975 = vsyncpa [#allocation9], 1 }
 0x790   :  { %976 = vsyncpa [#allocation4], 1 }

</bundles_post_ra>
